<compile_context>
chip_gen: v7x
topology: tpu7x:2x2x1
jax: 0.10.0
libtpu: 0.0.40
codegen_flags: <defaults>
</compile_context>

<pallas_src>
import functools

import jax
import jax.numpy as jnp
from jax.experimental import pallas as pl
from jax.experimental.pallas import tpu as pltpu


def _round_up(n, m):
    return ((n + m - 1) // m) * m


def _cdiv(a, b):
    return -(-a // b)


# ----------------------------------------------------------------------------
# Pallas kernel: one batch tile per grid step, all weights resident in VMEM.
# ----------------------------------------------------------------------------
def ae_forward_kernel(
    x_ref,
    w1_ref, b1_ref,     # encoder layer 1: dim_input -> d1
    w2_ref, b2_ref,     # encoder layer 2: d1 -> d2
    wz_ref, bz_ref,     # fc_z:            d2 -> z_dim
    w3_ref, b3_ref,     # decoder layer 1: z_dim -> d2
    w4_ref, b4_ref,     # decoder layer 2: d2 -> d1
    w5_ref, b5_ref,     # decoder layer 3: d1 -> dim_input
    xrec_ref,           # (tile_b, dim_input) output
    z_ref,              # (tile_b, z_dim)     output
    *, matmul_dtype,
):
    def dense(a, w_ref, b_ref):
        # MXU matmul, f32 accumulation. Weights are pre-cast to matmul_dtype in
        # the wrapper; a.astype is a no-op when a is already matmul_dtype.
        y = jnp.dot(a.astype(matmul_dtype), w_ref[...],
                    preferred_element_type=jnp.float32)
        return y + b_ref[...]          # bias kept f32, adds onto f32 acc

    x = x_ref[...]                     # loaded once in its stored dtype

    # ----- encoder -----
    h = jnp.maximum(dense(x, w1_ref, b1_ref), 0.0)
    h = jnp.maximum(dense(h, w2_ref, b2_ref), 0.0)

    # ----- fc_z -----
    z = dense(h, wz_ref, bz_ref)

    # ----- F.normalize(z, p=2, dim=1) = z / max(||z||_2, 1e-12)
    #       == z * rsqrt(max(sum(z*z), 1e-24))   (EUP rsqrt, no VPU divide)
    sumsq = jnp.sum(z * z, axis=1, keepdims=True)
    z_n = z * jax.lax.rsqrt(jnp.maximum(sumsq, 1e-24))

    # ----- decoder -----
    d = jnp.maximum(dense(z_n, w3_ref, b3_ref), 0.0)
    d = jnp.maximum(dense(d, w4_ref, b4_ref), 0.0)
    x_rec = dense(d, w5_ref, b5_ref)

    # ----- two direct stores (no 128-lane pad slab, no concat lane shuffle)
    xrec_ref[...] = x_rec.astype(xrec_ref.dtype)
    z_ref[...] = z_n.astype(z_ref.dtype)


# ----------------------------------------------------------------------------
# Wrapper
# ----------------------------------------------------------------------------
def _choose_tile(batch, max_tile=2048):
    """Batch tile: multiple of 8, <= max_tile, and >= 2 grid steps when the
    batch allows it (so a 'parallel' grid axis can shard across v7x's 2 TCs)."""
    if batch <= 8:
        return _round_up(max(batch, 1), 8)
    n_steps = max(2, _cdiv(batch, max_tile))
    return min(max_tile, _round_up(_cdiv(batch, n_steps), 8))


@functools.partial(jax.jit, static_argnames=("matmul_dtype", "out_dtype"))
def autoencoder_forward(x, params, matmul_dtype=jnp.float32, out_dtype=None):
    if out_dtype is None:
        out_dtype = matmul_dtype

    B, dim_input = x.shape
    d1 = params["w1"].shape[1]
    d2 = params["w2"].shape[1]
    z_dim = params["wz"].shape[1]

    tile_b = _choose_tile(B)
    b_pad = _round_up(B, tile_b)
    if b_pad != B:
        x = jnp.pad(x, ((0, b_pad - B), (0, 0)))
    grid = (b_pad // tile_b,)

    # Weights pre-cast to the MXU operand dtype (once, outside the kernel);
    # biases stay f32 so they add straight onto the f32 accumulation.
    names = ["w1", "b1", "w2", "b2", "wz", "bz",
             "w3", "b3", "w4", "b4", "w5", "b5"]
    weight_args = tuple(
        params[n].astype(matmul_dtype) if n.startswith("w")
        else params[n].astype(jnp.float32)
        for n in names)

    # x tile streamed over the batch grid; weights/biases use a constant
    # index_map (whole array each step) so they stay VMEM-resident.
    in_specs = [pl.BlockSpec((tile_b, dim_input), lambda i: (i, 0))]
    in_specs += [pl.BlockSpec(a.shape, lambda i: (0, 0)) for a in weight_args]

    out_specs = (
        pl.BlockSpec((tile_b, dim_input), lambda i: (i, 0)),
        pl.BlockSpec((tile_b, z_dim), lambda i: (i, 0)),
    )
    out_shape = (
        jax.ShapeDtypeStruct((b_pad, dim_input), out_dtype),
        jax.ShapeDtypeStruct((b_pad, z_dim), out_dtype),
    )

    flops = 2 * b_pad * (dim_input * d1 + d1 * d2 + d2 * z_dim
                         + z_dim * d2 + d2 * d1 + d1 * dim_input)
    param_bytes = sum(int(a.size) * a.dtype.itemsize for a in weight_args)
    out_bytes = b_pad * (dim_input + z_dim) * jnp.dtype(out_dtype).itemsize
    bytes_accessed = int(x.size) * x.dtype.itemsize + param_bytes + out_bytes

    kernel = functools.partial(ae_forward_kernel, matmul_dtype=matmul_dtype)

    x_rec, z_n = pl.pallas_call(
        kernel,
        grid=grid,
        in_specs=in_specs,
        out_specs=out_specs,
        out_shape=out_shape,
        compiler_params=pltpu.CompilerParams(
            dimension_semantics=("parallel",)),
        cost_estimate=pl.CostEstimate(
            flops=flops, transcendentals=b_pad, bytes_accessed=bytes_accessed),
    )(x, *weight_args)

    if b_pad != B:
        x_rec = x_rec[:B]
        z_n = z_n[:B]
    return x_rec, z_n


# ----------------------------------------------------------------------------
# Deterministic parameter init (kaiming_normal fan_in; biases = 0).
# Linear(in, out) weight stored pre-transposed as (in, out).
# ----------------------------------------------------------------------------
def init_params(key, dim_input, z_dim=32):
    d0 = dim_input
    d1 = max(dim_input // 2, 4)
    d2 = max(dim_input // 4, 4)

    def kaiming(k, fan_in, fan_out):
        std = (2.0 / fan_in) ** 0.5
        return jax.random.normal(k, (fan_in, fan_out), dtype=jnp.float32) * std

    keys = jax.random.split(key, 6)
    return {
        "w1": kaiming(keys[0], d0, d1),     "b1": jnp.zeros((1, d1), jnp.float32),
        "w2": kaiming(keys[1], d1, d2),     "b2": jnp.zeros((1, d2), jnp.float32),
        "wz": kaiming(keys[2], d2, z_dim),  "bz": jnp.zeros((1, z_dim), jnp.float32),
        "w3": kaiming(keys[3], z_dim, d2),  "b3": jnp.zeros((1, d2), jnp.float32),
        "w4": kaiming(keys[4], d2, d1),     "b4": jnp.zeros((1, d1), jnp.float32),
        "w5": kaiming(keys[5], d1, d0),     "b5": jnp.zeros((1, d0), jnp.float32),
    }


# ----------------------------------------------------------------------------
# Pure-JAX reference
# ----------------------------------------------------------------------------
def reference_forward(x, p):
    h = jnp.maximum(x @ p["w1"] + p["b1"], 0.0)
    h = jnp.maximum(h @ p["w2"] + p["b2"], 0.0)
    z = h @ p["wz"] + p["bz"]
    zn = z / jnp.maximum(jnp.linalg.norm(z, axis=1, keepdims=True), 1e-12)
    d = jnp.maximum(zn @ p["w3"] + p["b3"], 0.0)
    d = jnp.maximum(d @ p["w4"] + p["b4"], 0.0)
    xr = d @ p["w5"] + p["b5"]
    return xr, zn


if __name__ == "__main__":
    dim_input = 64
    z_dim = 32

    key = jax.random.PRNGKey(0)
    kx, kp, kx2 = jax.random.split(key, 3)
    params = init_params(kp, dim_input, z_dim)

    # Small batch: single grid step, f32 everywhere.
    x = jax.random.normal(kx, (8, dim_input), dtype=jnp.float32)
    x_recon, z_norm = autoencoder_forward(x, params, matmul_dtype=jnp.float32)
    jax.block_until_ready((x_recon, z_norm))
    xr_ref, zn_ref = reference_forward(x, params)
    assert x_recon.shape == (8, dim_input)
    assert z_norm.shape == (8, z_dim)
    assert jnp.allclose(x_recon, xr_ref, atol=1e-2, rtol=1e-2)
    assert jnp.allclose(z_norm, zn_ref, atol=5e-3, rtol=5e-3)

    # Larger batch: multi-step "parallel" grid (>=2 steps -> v7x megacore),
    # bf16 input / MXU operands / outputs (f32 accumulation inside).
    x2 = jax.random.normal(kx2, (384, dim_input), dtype=jnp.float32)
    xr2, zn2 = autoencoder_forward(x2.astype(jnp.bfloat16), params,
                                   matmul_dtype=jnp.bfloat16)
    jax.block_until_ready((xr2, zn2))
    xr2_ref, zn2_ref = reference_forward(x2, params)
    assert xr2.shape == (384, dim_input)
    assert zn2.shape == (384, z_dim)
    assert jnp.allclose(xr2.astype(jnp.float32), xr2_ref, atol=1e-1, rtol=1e-1)
    assert jnp.allclose(zn2.astype(jnp.float32), zn2_ref, atol=5e-2, rtol=5e-2)

    print("KERNEL_OK")
</pallas_src>

<mosaic_0001>
module attributes {stable_mosaic.version = 11 : i64} {
  func.func @ae_forward_kernel(%arg0: i32, %arg1: memref<8x64xf32, #tpu.memory_space<vmem>>, %arg2: memref<64x32xf32, #tpu.memory_space<vmem>>, %arg3: memref<1x32xf32, #tpu.memory_space<vmem>>, %arg4: memref<32x16xf32, #tpu.memory_space<vmem>>, %arg5: memref<1x16xf32, #tpu.memory_space<vmem>>, %arg6: memref<16x32xf32, #tpu.memory_space<vmem>>, %arg7: memref<1x32xf32, #tpu.memory_space<vmem>>, %arg8: memref<32x16xf32, #tpu.memory_space<vmem>>, %arg9: memref<1x16xf32, #tpu.memory_space<vmem>>, %arg10: memref<16x32xf32, #tpu.memory_space<vmem>>, %arg11: memref<1x32xf32, #tpu.memory_space<vmem>>, %arg12: memref<32x64xf32, #tpu.memory_space<vmem>>, %arg13: memref<1x64xf32, #tpu.memory_space<vmem>>, %arg14: memref<8x64xf32, #tpu.memory_space<vmem>>, %arg15: memref<8x32xf32, #tpu.memory_space<vmem>>) attributes {dimension_semantics = [#tpu.dimension_semantics<parallel>], iteration_bounds = array<i64: 1>, scalar_prefetch = 0 : i64, scratch_operands = 0 : i64, tpu.core_type = #tpu.core_type<tc>, window_params = [{transform_indices = @transform_0, window_bounds = array<i64: 8, 64>}, {pipeline_mode = #tpu.pipeline_mode<synchronous>, transform_indices = @transform_1, window_bounds = array<i64: 64, 32>}, {pipeline_mode = #tpu.pipeline_mode<synchronous>, transform_indices = @transform_2, window_bounds = array<i64: 1, 32>}, {pipeline_mode = #tpu.pipeline_mode<synchronous>, transform_indices = @transform_3, window_bounds = array<i64: 32, 16>}, {pipeline_mode = #tpu.pipeline_mode<synchronous>, transform_indices = @transform_4, window_bounds = array<i64: 1, 16>}, {pipeline_mode = #tpu.pipeline_mode<synchronous>, transform_indices = @transform_5, window_bounds = array<i64: 16, 32>}, {pipeline_mode = #tpu.pipeline_mode<synchronous>, transform_indices = @transform_6, window_bounds = array<i64: 1, 32>}, {pipeline_mode = #tpu.pipeline_mode<synchronous>, transform_indices = @transform_7, window_bounds = array<i64: 32, 16>}, {pipeline_mode = #tpu.pipeline_mode<synchronous>, transform_indices = @transform_8, window_bounds = array<i64: 1, 16>}, {pipeline_mode = #tpu.pipeline_mode<synchronous>, transform_indices = @transform_9, window_bounds = array<i64: 16, 32>}, {pipeline_mode = #tpu.pipeline_mode<synchronous>, transform_indices = @transform_10, window_bounds = array<i64: 1, 32>}, {pipeline_mode = #tpu.pipeline_mode<synchronous>, transform_indices = @transform_11, window_bounds = array<i64: 32, 64>}, {pipeline_mode = #tpu.pipeline_mode<synchronous>, transform_indices = @transform_12, window_bounds = array<i64: 1, 64>}, {transform_indices = @transform_13, window_bounds = array<i64: 8, 64>}, {transform_indices = @transform_14, window_bounds = array<i64: 8, 32>}]} {
    %c0 = arith.constant 0 : index
    %c0_0 = arith.constant 0 : index
    %0 = vector.load %arg1[%c0, %c0_0] : memref<8x64xf32, #tpu.memory_space<vmem>>, vector<8x64xf32>
    %c0_1 = arith.constant 0 : index
    %c0_2 = arith.constant 0 : index
    %1 = vector.load %arg2[%c0_1, %c0_2] : memref<64x32xf32, #tpu.memory_space<vmem>>, vector<64x32xf32>
    %cst = arith.constant dense<0.000000e+00> : vector<8x32xf32>
    %2 = tpu.matmul %0, %1, %cst {dimension_numbers = #tpu.dot_dimension_numbers<[1], [0], [0], [1], [0, 0, 1, 1], [], []>} : vector<8x64xf32>, vector<64x32xf32>, vector<8x32xf32> -> vector<8x32xf32>
    %c0_3 = arith.constant 0 : index
    %c0_4 = arith.constant 0 : index
    %3 = vector.load %arg3[%c0_3, %c0_4] : memref<1x32xf32, #tpu.memory_space<vmem>>, vector<1x32xf32>
    %4 = vector.broadcast %3 : vector<1x32xf32> to vector<8x32xf32>
    %5 = arith.addf %2, %4 : vector<8x32xf32>
    %cst_5 = arith.constant 0.000000e+00 : f32
    %6 = vector.broadcast %cst_5 : f32 to vector<8x32xf32>
    %7 = arith.maximumf %5, %6 : vector<8x32xf32>
    %c0_6 = arith.constant 0 : index
    %c0_7 = arith.constant 0 : index
    %8 = vector.load %arg4[%c0_6, %c0_7] : memref<32x16xf32, #tpu.memory_space<vmem>>, vector<32x16xf32>
    %cst_8 = arith.constant dense<0.000000e+00> : vector<8x16xf32>
    %9 = tpu.matmul %7, %8, %cst_8 {dimension_numbers = #tpu.dot_dimension_numbers<[1], [0], [0], [1], [0, 0, 1, 1], [], []>} : vector<8x32xf32>, vector<32x16xf32>, vector<8x16xf32> -> vector<8x16xf32>
    %c0_9 = arith.constant 0 : index
    %c0_10 = arith.constant 0 : index
    %10 = vector.load %arg5[%c0_9, %c0_10] : memref<1x16xf32, #tpu.memory_space<vmem>>, vector<1x16xf32>
    %11 = vector.broadcast %10 : vector<1x16xf32> to vector<8x16xf32>
    %12 = arith.addf %9, %11 : vector<8x16xf32>
    %cst_11 = arith.constant 0.000000e+00 : f32
    %13 = vector.broadcast %cst_11 : f32 to vector<8x16xf32>
    %14 = arith.maximumf %12, %13 : vector<8x16xf32>
    %c0_12 = arith.constant 0 : index
    %c0_13 = arith.constant 0 : index
    %15 = vector.load %arg6[%c0_12, %c0_13] : memref<16x32xf32, #tpu.memory_space<vmem>>, vector<16x32xf32>
    %cst_14 = arith.constant dense<0.000000e+00> : vector<8x32xf32>
    %16 = tpu.matmul %14, %15, %cst_14 {dimension_numbers = #tpu.dot_dimension_numbers<[1], [0], [0], [1], [0, 0, 1, 1], [], []>} : vector<8x16xf32>, vector<16x32xf32>, vector<8x32xf32> -> vector<8x32xf32>
    %c0_15 = arith.constant 0 : index
    %c0_16 = arith.constant 0 : index
    %17 = vector.load %arg7[%c0_15, %c0_16] : memref<1x32xf32, #tpu.memory_space<vmem>>, vector<1x32xf32>
    %18 = vector.broadcast %17 : vector<1x32xf32> to vector<8x32xf32>
    %19 = arith.addf %16, %18 : vector<8x32xf32>
    %20 = arith.mulf %19, %19 : vector<8x32xf32>
    %cst_17 = arith.constant dense<0.000000e+00> : vector<8xf32>
    %21 = vector.multi_reduction <add>, %20, %cst_17 [1] : vector<8x32xf32> to vector<8xf32>
    %22 = vector.shape_cast %21 : vector<8xf32> to vector<8x1xf32>
    %cst_18 = arith.constant 1.000000e-24 : f32
    %23 = vector.broadcast %cst_18 : f32 to vector<8x1xf32>
    %24 = arith.maximumf %22, %23 : vector<8x1xf32>
    %25 = math.rsqrt %24 : vector<8x1xf32>
    %26 = vector.broadcast %25 : vector<8x1xf32> to vector<8x32xf32>
    %27 = arith.mulf %19, %26 : vector<8x32xf32>
    %c0_19 = arith.constant 0 : index
    %c0_20 = arith.constant 0 : index
    %28 = vector.load %arg8[%c0_19, %c0_20] : memref<32x16xf32, #tpu.memory_space<vmem>>, vector<32x16xf32>
    %cst_21 = arith.constant dense<0.000000e+00> : vector<8x16xf32>
    %29 = tpu.matmul %27, %28, %cst_21 {dimension_numbers = #tpu.dot_dimension_numbers<[1], [0], [0], [1], [0, 0, 1, 1], [], []>} : vector<8x32xf32>, vector<32x16xf32>, vector<8x16xf32> -> vector<8x16xf32>
    %c0_22 = arith.constant 0 : index
    %c0_23 = arith.constant 0 : index
    %30 = vector.load %arg9[%c0_22, %c0_23] : memref<1x16xf32, #tpu.memory_space<vmem>>, vector<1x16xf32>
    %31 = vector.broadcast %30 : vector<1x16xf32> to vector<8x16xf32>
    %32 = arith.addf %29, %31 : vector<8x16xf32>
    %cst_24 = arith.constant 0.000000e+00 : f32
    %33 = vector.broadcast %cst_24 : f32 to vector<8x16xf32>
    %34 = arith.maximumf %32, %33 : vector<8x16xf32>
    %c0_25 = arith.constant 0 : index
    %c0_26 = arith.constant 0 : index
    %35 = vector.load %arg10[%c0_25, %c0_26] : memref<16x32xf32, #tpu.memory_space<vmem>>, vector<16x32xf32>
    %cst_27 = arith.constant dense<0.000000e+00> : vector<8x32xf32>
    %36 = tpu.matmul %34, %35, %cst_27 {dimension_numbers = #tpu.dot_dimension_numbers<[1], [0], [0], [1], [0, 0, 1, 1], [], []>} : vector<8x16xf32>, vector<16x32xf32>, vector<8x32xf32> -> vector<8x32xf32>
    %c0_28 = arith.constant 0 : index
    %c0_29 = arith.constant 0 : index
    %37 = vector.load %arg11[%c0_28, %c0_29] : memref<1x32xf32, #tpu.memory_space<vmem>>, vector<1x32xf32>
    %38 = vector.broadcast %37 : vector<1x32xf32> to vector<8x32xf32>
    %39 = arith.addf %36, %38 : vector<8x32xf32>
    %cst_30 = arith.constant 0.000000e+00 : f32
    %40 = vector.broadcast %cst_30 : f32 to vector<8x32xf32>
    %41 = arith.maximumf %39, %40 : vector<8x32xf32>
    %c0_31 = arith.constant 0 : index
    %c0_32 = arith.constant 0 : index
    %42 = vector.load %arg12[%c0_31, %c0_32] : memref<32x64xf32, #tpu.memory_space<vmem>>, vector<32x64xf32>
    %cst_33 = arith.constant dense<0.000000e+00> : vector<8x64xf32>
    %43 = tpu.matmul %41, %42, %cst_33 {dimension_numbers = #tpu.dot_dimension_numbers<[1], [0], [0], [1], [0, 0, 1, 1], [], []>} : vector<8x32xf32>, vector<32x64xf32>, vector<8x64xf32> -> vector<8x64xf32>
    %c0_34 = arith.constant 0 : index
    %c0_35 = arith.constant 0 : index
    %44 = vector.load %arg13[%c0_34, %c0_35] : memref<1x64xf32, #tpu.memory_space<vmem>>, vector<1x64xf32>
    %45 = vector.broadcast %44 : vector<1x64xf32> to vector<8x64xf32>
    %46 = arith.addf %43, %45 : vector<8x64xf32>
    %c0_36 = arith.constant 0 : index
    %c0_37 = arith.constant 0 : index
    %47 = vector.load %arg14[%c0_36, %c0_37] : memref<8x64xf32, #tpu.memory_space<vmem>>, vector<8x64xf32>
    tpu.vector_store %arg14[%c0_36, %c0_37], %46 {strides = array<i32>} : memref<8x64xf32, #tpu.memory_space<vmem>>, vector<8x64xf32>,
    %c0_38 = arith.constant 0 : index
    %c0_39 = arith.constant 0 : index
    %48 = vector.load %arg15[%c0_38, %c0_39] : memref<8x32xf32, #tpu.memory_space<vmem>>, vector<8x32xf32>
    tpu.vector_store %arg15[%c0_38, %c0_39], %27 {strides = array<i32>} : memref<8x32xf32, #tpu.memory_space<vmem>>, vector<8x32xf32>,
    return
  }
  func.func @transform_0(%arg0: i32) -> (i32, i32) {
    %c0_i32 = arith.constant 0 : i32
    %c0_i32_0 = arith.constant 0 : i32
    return %arg0, %c0_i32 : i32, i32
  }
  func.func @transform_1(%arg0: i32) -> (i32, i32) {
    %c0_i32 = arith.constant 0 : i32
    %c0_i32_0 = arith.constant 0 : i32
    %c0_i32_1 = arith.constant 0 : i32
    return %c0_i32, %c0_i32_0 : i32, i32
  }
  func.func @transform_2(%arg0: i32) -> (i32, i32) {
    %c0_i32 = arith.constant 0 : i32
    %c0_i32_0 = arith.constant 0 : i32
    %c0_i32_1 = arith.constant 0 : i32
    return %c0_i32, %c0_i32_0 : i32, i32
  }
  func.func @transform_3(%arg0: i32) -> (i32, i32) {
    %c0_i32 = arith.constant 0 : i32
    %c0_i32_0 = arith.constant 0 : i32
    %c0_i32_1 = arith.constant 0 : i32
    return %c0_i32, %c0_i32_0 : i32, i32
  }
  func.func @transform_4(%arg0: i32) -> (i32, i32) {
    %c0_i32 = arith.constant 0 : i32
    %c0_i32_0 = arith.constant 0 : i32
    %c0_i32_1 = arith.constant 0 : i32
    return %c0_i32, %c0_i32_0 : i32, i32
  }
  func.func @transform_5(%arg0: i32) -> (i32, i32) {
    %c0_i32 = arith.constant 0 : i32
    %c0_i32_0 = arith.constant 0 : i32
    %c0_i32_1 = arith.constant 0 : i32
    return %c0_i32, %c0_i32_0 : i32, i32
  }
  func.func @transform_6(%arg0: i32) -> (i32, i32) {
    %c0_i32 = arith.constant 0 : i32
    %c0_i32_0 = arith.constant 0 : i32
    %c0_i32_1 = arith.constant 0 : i32
    return %c0_i32, %c0_i32_0 : i32, i32
  }
  func.func @transform_7(%arg0: i32) -> (i32, i32) {
    %c0_i32 = arith.constant 0 : i32
    %c0_i32_0 = arith.constant 0 : i32
    %c0_i32_1 = arith.constant 0 : i32
    return %c0_i32, %c0_i32_0 : i32, i32
  }
  func.func @transform_8(%arg0: i32) -> (i32, i32) {
    %c0_i32 = arith.constant 0 : i32
    %c0_i32_0 = arith.constant 0 : i32
    %c0_i32_1 = arith.constant 0 : i32
    return %c0_i32, %c0_i32_0 : i32, i32
  }
  func.func @transform_9(%arg0: i32) -> (i32, i32) {
    %c0_i32 = arith.constant 0 : i32
    %c0_i32_0 = arith.constant 0 : i32
    %c0_i32_1 = arith.constant 0 : i32
    return %c0_i32, %c0_i32_0 : i32, i32
  }
  func.func @transform_10(%arg0: i32) -> (i32, i32) {
    %c0_i32 = arith.constant 0 : i32
    %c0_i32_0 = arith.constant 0 : i32
    %c0_i32_1 = arith.constant 0 : i32
    return %c0_i32, %c0_i32_0 : i32, i32
  }
  func.func @transform_11(%arg0: i32) -> (i32, i32) {
    %c0_i32 = arith.constant 0 : i32
    %c0_i32_0 = arith.constant 0 : i32
    %c0_i32_1 = arith.constant 0 : i32
    return %c0_i32, %c0_i32_0 : i32, i32
  }
  func.func @transform_12(%arg0: i32) -> (i32, i32) {
    %c0_i32 = arith.constant 0 : i32
    %c0_i32_0 = arith.constant 0 : i32
    %c0_i32_1 = arith.constant 0 : i32
    return %c0_i32, %c0_i32_0 : i32, i32
  }
  func.func @transform_13(%arg0: i32) -> (i32, i32) {
    %c0_i32 = arith.constant 0 : i32
    %c0_i32_0 = arith.constant 0 : i32
    return %arg0, %c0_i32 : i32, i32
  }
  func.func @transform_14(%arg0: i32) -> (i32, i32) {
    %c0_i32 = arith.constant 0 : i32
    %c0_i32_0 = arith.constant 0 : i32
    return %arg0, %c0_i32 : i32, i32
  }
}

</mosaic_0001>

<bundles_post_ra>
// kernel: autoencoder_forward.1
= control target key start
LH: loop header
LB: loop body
LE: loop exit
PB: predicated region body
PF: predicated region fallthrough
CT: control target
= control target key end

     0   :  { %20 = vsyncpa [#allocation3], 0  ;;  %v796_v3 = vmov 0.0|0.0   ;;  %vm797_vm0 = vmmov 0   ;;  %v798_v6 = vmov 0.0   ;;  %s1026_s0 = inlined_call_operand.vmem [shape: f32[8,64], index: 0, kind: input, shape index: {}]   ;;  %s1027_s1 = inlined_call_operand.vmem [shape: f32[64,32], index: 1, kind: input, shape index: {}]   ;;  %s1028_s2 = inlined_call_operand.vmem [shape: f32[1,32], index: 2, kind: input, shape index: {}]   ;;  %s1029_s3 = inlined_call_operand.vmem [shape: f32[32,16], index: 3, kind: input, shape index: {}]   ;;  %s1030_s4 = inlined_call_operand.vmem [shape: f32[1,16], index: 4, kind: input, shape index: {}]   ;;  %s1031_s5 = inlined_call_operand.vmem [shape: f32[16,32], index: 5, kind: input, shape index: {}]   ;;  %s1032_s6 = inlined_call_operand.vmem [shape: f32[1,32], index: 6, kind: input, shape index: {}]   ;;  %s1033_s7 = inlined_call_operand.vmem [shape: f32[32,16], index: 7, kind: input, shape index: {}]   ;;  %s1034_s8 = inlined_call_operand.vmem [shape: f32[1,16], index: 8, kind: input, shape index: {}]   ;;  %s1035_s9 = inlined_call_operand.vmem [shape: f32[16,32], index: 9, kind: input, shape index: {}]   ;;  %s1036_s10 = inlined_call_operand.vmem [shape: f32[1,32], index: 10, kind: input, shape index: {}]   ;;  %s1037_s11 = inlined_call_operand.vmem [shape: f32[32,64], index: 11, kind: input, shape index: {}]   ;;  %s1038_s12 = inlined_call_operand.vmem [shape: f32[1,64], index: 12, kind: input, shape index: {}]   ;;  %s1039_s13 = inlined_call_operand.hbm [shape: f32[8,64], index: 13, kind: output, shape index: {0}]   ;;  %s1040_s14 = inlined_call_operand.hbm [shape: f32[8,32], index: 14, kind: output, shape index: {1}]  }
   0x1   :  { %v49_v0 = vld [vmem:[%s1027_s1] sm:$0xff]  ;;  %v50_v1 = vld [vmem:[%s1027_s1 + $0x8] sm:$0xff]  ;;  %v51_v2 = vld [vmem:[%s1027_s1 + $0x10] sm:$0xff]  ;;  %705 = vmatprep.subr.bf16.mxu0 %v796_v3  ;;  %655 = vmatprep.mubr.msk.f32.mxu0 %vm797_vm0, %v798_v6 }
   0x2   :  { %v706_v4 = vpack.c.bf16 %v50_v1, %v49_v0  ;;  %v52_v5 = vld [vmem:[%s1027_s1 + $0x18] sm:$0xff]  ;;  %717 = vmatprep.subr.bf16.mxu1 %v796_v3  ;;  %666 = vmatprep.mubr.msk.f32.mxu1 %vm797_vm0, %v798_v6  ;;  %v139_v8 = vld [vmem:[%s1029_s3] sm:$0xff]  ;;  %v140_v9 = vld [vmem:[%s1029_s3 + $0x8] sm:$0xff] }
   0x3   :  { %v709_v7 = vpack.c.bf16 %v52_v5, %v51_v2  ;;  %v53_v10 = vld [vmem:[%s1027_s1 + $0x20] sm:$0xff]  ;;  %v54_v11 = vld [vmem:[%s1027_s1 + $0x28] sm:$0xff]  ;;  %v718_v12 = vpack.c.bf16 %v140_v9, %v139_v8 }
   0x4   :  { %707 = vmatpush3.bf16.msra.mxu0 %v706_v4 }
   0x5   :  { %708 = vmatprep.subr.bf16.mxu0 %v796_v3 }
   0x6   :  { %21 = vsyncpa [#allocation5], 0  ;;  %719 = vmatpush3.bf16.msra.mxu1 %v718_v12  ;;  %v712_v13 = vpack.c.bf16 %v54_v11, %v53_v10  ;;  %v55_v14 = vld [vmem:[%s1027_s1 + $0x30] sm:$0xff]  ;;  %v56_v15 = vld [vmem:[%s1027_s1 + $0x38] sm:$0xff]  ;;  %vm64_vm1 = vcmask 523264   ;;  %vm150_vm2 = vcmask 261120  }
   0x7   :  { %720 = vmatprep.subr.bf16.mxu1 %v796_v3  ;;  %v715_v16 = vpack.c.bf16 %v56_v15, %v55_v14  ;;  %v48_v17 = vld [vmem:[%s1026_s0] sm:$0xff]  ;;  %v141_v18 = vld [vmem:[%s1029_s3 + $0x10] sm:$0xff]  ;;  %v142_v19 = vld [vmem:[%s1029_s3 + $0x18] sm:$0xff]  ;;  %vm234_vm3 = vcmask 130048  }
   0x8   :  { %710 = vmatpush3.bf16.msra.mxu0 %v709_v7  ;;  %v721_v20 = vpack.c.bf16 %v142_v19, %v141_v18  ;;  %v597_v21 = vld [vmem:[%s1028_s2] ss:$0 sm:$0xff]  ;;  %v226_v27 = vld [vmem:[%s1031_s5 + $0x8] sm:$0xff]  ;;  %v317_v43 = vld [vmem:[%s1033_s7 + $0x10] sm:$0xff] }
   0x9   :  { %711 = vmatprep.subr.bf16.mxu0 %v796_v3  ;;  %v225_v26 = vld [vmem:[%s1031_s5] sm:$0xff]  ;;  %v316_v41 = vld [vmem:[%s1033_s7 + $0x8] sm:$0xff]  ;;  %v318_v44 = vld [vmem:[%s1033_s7 + $0x18] sm:$0xff] }
   0xa   :  { %722 = vmatpush3.bf16.msra.mxu1 %v721_v20  ;;  %v724_v28 = vpack.c.bf16 %v226_v27, %v225_v26  ;;  %v599_v29 = vld [vmem:[%s1030_s4] ss:$0 sm:$0xff]  ;;  %v730_v45 = vpack.c.bf16 %v318_v44, %v317_v43  ;;  %v401_v51 = vld [vmem:[%s1035_s9 + $0x8] sm:$0xff]  ;;  %v485_v61 = vld [vmem:[%s1037_s11 + $0x10] sm:$0xff] }
   0xb   :  { %723 = vmatprep.subr.bf16.mxu1 %v796_v3  ;;  %v601_v34 = vld [vmem:[%s1032_s6] ss:$0 sm:$0xff]  ;;  %v484_v54 = vld [vmem:[%s1037_s11 + $0x8] sm:$0xff]  ;;  %v486_v62 = vld [vmem:[%s1037_s11 + $0x18] sm:$0xff] }
   0xc   :  { %713 = vmatpush3.bf16.msra.mxu0 %v712_v13  ;;  %v315_v40 = vld [vmem:[%s1033_s7] sm:$0xff]  ;;  %v739_v63 = vpack.c.bf16 %v486_v62, %v485_v61 }
   0xd   :  { %714 = vmatprep.subr.bf16.mxu0 %v796_v3  ;;  %v727_v42 = vpack.c.bf16 %v316_v41, %v315_v40  ;;  %v400_v50 = vld [vmem:[%s1035_s9] sm:$0xff] }
   0xe   :  { %v733_v52 = vpack.c.bf16 %v401_v51, %v400_v50  ;;  %v483_v53 = vld [vmem:[%s1037_s11] sm:$0xff] }
   0xf   :  { %v736_v55 = vpack.c.bf16 %v484_v54, %v483_v53  ;;  %v603_v56 = vld [vmem:[%s1034_s8] ss:$0 sm:$0xff]  ;;  %s799_s8 = smov [#allocation4]  }
  0x10   :  { %716 = vmatpush3.bf16.msra.mxu0 %v715_v16  ;;  %v605_v0 = vld [vmem:[%s1036_s10] ss:$0 sm:$0xff]  ;;  %s585_s5 = sshll.u32 %s799_s8, 4  ;;  %s586_s5 = int_to_ptr.vmem [resolvable:$true] %s585_s5 }
  0x11   :  { %735 = vmatprep.subr.bf16.mxu0 %v796_v3  ;;  %s748_s4 = scalar_lea.vmem %s586_s5, 128  ;;  %p753_p1 = scmp.lt.s32.totalorder %s586_s5, %s586_s5 }
  0x12   :  { %p749_p0 = scmp.ne.s32.totalorder %s586_s5, %s748_s4  ;;  %p754_p2 = scmp.lt.s32.totalorder %s748_s4, %s748_s4 }
  0x13   :  { %656 = vmatmul.mubr.msk.f32.vlgmr.msra.gmra.mrb[0].mxu0 %vm64_vm1, %v48_v17 }
  0x14   :  { %702 = vmatprep.mubr.msk.f32.mxu0 %vm797_vm0, %v798_v6  ;;  %737 = vmatpush3.bf16.msra.mxu0 %v736_v55  ;;  %p755_p3 = por %p754_p2, %p753_p1 }
  0x15   :  { %738 = vmatprep.subr.bf16.mxu0 %v796_v3 }
  0x16   :  { %p756_p4 = pnand %p755_p3, %p749_p0 }
  0x18   :  { %740 = vmatpush3.bf16.msra.mxu0 %v739_v63 }
  0xe6   :  { %v134_v22 = vpop.f32.mrb[0].mxu0 }
  0xe7   :  { %v135_v23 = vadd.f32 %v597_v21, %v134_v22  ;;  %v657_v24 = vpop.f32.mrb[1].mxu0 }
  0xe9   :  { %v138_v25 = vmax.f32 %v135_v23, 0.0 }
  0xeb   :  { %667 = vmatmul.mubr.msk.f32.vlgmr.msra.gmra.mrb[0].mxu1 %vm150_vm2, %v138_v25 }
  0xec   :  { %673 = vmatprep.mubr.msk.f32.mxu1 %vm797_vm0, %v798_v6  ;;  %725 = vmatpush3.bf16.msra.mxu1 %v724_v28 }
  0xed   :  { %726 = vmatprep.subr.bf16.mxu1 %v796_v3 }
 0x1be   :  { %v220_v30 = vpop.f32.mrb[0].mxu1 }
 0x1bf   :  { %v221_v31 = vadd.f32 %v599_v29, %v220_v30  ;;  %v668_v32 = vpop.f32.mrb[1].mxu1 }
 0x1c1   :  { %v224_v33 = vmax.f32 %v221_v31, 0.0 }
 0x1c3   :  { %674 = vmatmul.mubr.msk.f32.vlgmr.msra.gmra.mrb[2].mxu1 %vm234_vm3, %v224_v33 }
 0x1c4   :  { %684 = vmatprep.mubr.msk.f32.mxu1 %vm797_vm0, %v798_v6  ;;  %728 = vmatpush3.bf16.msra.mxu1 %v727_v42 }
 0x1c5   :  { %729 = vmatprep.subr.bf16.mxu1 %v796_v3 }
 0x1c8   :  { %731 = vmatpush3.bf16.msra.mxu1 %v730_v45 }
 0x1c9   :  { %732 = vmatprep.subr.bf16.mxu1 %v796_v3 }
 0x296   :  { %v304_v35 = vpop.f32.mrb[2].mxu1 }
 0x297   :  { %v305_v36 = vadd.f32 %v601_v34, %v304_v35  ;;  %v675_v37 = vpop.f32.mrb[3].mxu1 }
 0x299   :  { %v308_v38 = vmul.f32 %v305_v36, %v305_v36 }
 0x29b   :  { %v309_v39 = vsel %vm150_vm2, %v308_v38, 0.0 }
 0x29c   :  { %310 = vadd.xlane.f32.xlu0 %v309_v39 }
 0x329   :  { %v311_v46 = vpop.xlane.xlu0 %310 }
 0x32a   :  { %v312_v47 = vmax.f32 %v311_v46, 1e-24 }
 0x32c   :  { %746 = vrsqrt.f32 %v312_v47 }
 0x336   :  { %v747_v48 = vpop.eup %746 }
 0x337   :  { %v314_v49 = vmul.f32 %v747_v48, %v305_v36 }
 0x339   :  { %568 = vst.msk [vmem:[#allocation4] sm:$0xff] %vm150_vm2, %v314_v49  ;;  %685 = vmatmul.mubr.msk.f32.vlgmr.msra.gmra.mrb[4].mxu1 %vm150_vm2, %v314_v49 }
 0x33a   :  { %691 = vmatprep.mubr.msk.f32.mxu1 %vm797_vm0, %v798_v6  ;;  %734 = vmatpush3.bf16.msra.mxu1 %v733_v52 }
 0x40c   :  { %v395_v57 = vpop.f32.mrb[4].mxu1 }
 0x40d   :  { %v396_v58 = vadd.f32 %v603_v56, %v395_v57  ;;  %v686_v59 = vpop.f32.mrb[5].mxu1 }
 0x40f   :  { %v399_v60 = vmax.f32 %v396_v58, 0.0 }
 0x411   :  { %692 = vmatmul.mubr.msk.f32.vlgmr.msra.gmra.mrb[6].mxu1 %vm234_vm3, %v399_v60 }
 0x4e4   :  { %v478_v1 = vpop.f32.mrb[6].mxu1 }
 0x4e5   :  { %v479_v2 = vadd.f32 %v605_v0, %v478_v1  ;;  %v693_v3 = vpop.f32.mrb[7].mxu1 }
 0x4e7   :  { %v482_v4 = vmax.f32 %v479_v2, 0.0 }
 0x4e9   :  { %703 = vmatmul.mubr.msk.f32.vlgmr.msra.gmra.mrb[2].mxu0 %vm150_vm2, %v482_v4 }
 0x4ea   :  { %759 = shalt.err (!%p756_p4)
}
 0x4eb   :  { %s760_s10 = scalar_lea.hbm %s1040_s14, 128 }
 0x4ec   :  { %p761_p5 = scmp.ne.s32.totalorder %s1040_s14, %s760_s10  ;;  %p764_p6 = scmp.lt.u32.totalorder %s760_s10, %s1040_s14 }
 0x4ee   :  { %p766_p7 = pnand %p764_p6, %p761_p5 }
 0x4f0   :  { %769 = shalt.err (!%p766_p7)
}
 0x4f1   :  { %588 = dma.vmem_to_hbm [thread:$0]  %s586_s5, 128, %s1040_s14, [#allocation5]   ;;  %v607_v5 = vld [vmem:[%s1038_s12] ss:$0 sm:$0xff] }
 0x4f2   :  { %s800_s7 = smov [#allocation2]  }
 0x4f3   :  { %s575_s20 = sshll.u32 %s800_s7, 4  ;;  %s576_s20 = int_to_ptr.vmem [resolvable:$true] %s575_s20 }
 0x4f4   :  { %s770_s1 = scalar_lea.vmem %s576_s20, 128  ;;  %p775_p9 = scmp.lt.s32.totalorder %s576_s20, %s576_s20 }
 0x4f5   :  { %p771_p8 = scmp.ne.s32.totalorder %s576_s20, %s770_s1  ;;  %p776_p10 = scmp.lt.s32.totalorder %s770_s1, %s770_s1 }
 0x4f7   :  { %p777_p11 = por %p776_p10, %p775_p9 }
 0x4f9   :  { %p778_p12 = pnand %p777_p11, %p771_p8 }
 0x5bc   :  { %v563_v6 = vpop.f32.mrb[2].mxu0 }
 0x5bd   :  { %v564_v7 = vadd.f32 %v607_v5, %v563_v6  ;;  %v704_v8 = vpop.f32.mrb[3].mxu0 }
 0x5bf   :  { %567 = vst.msk [vmem:[#allocation2] sm:$0xff] %vm64_vm1, %v564_v7 }
 0x5c0   :  { %781 = shalt.err (!%p778_p12)
}
 0x5c1   :  { %s782_s0 = scalar_lea.hbm %s1039_s13, 128 }
 0x5c2   :  { %p783_p13 = scmp.ne.s32.totalorder %s1039_s13, %s782_s0  ;;  %p786_p0 = scmp.lt.u32.totalorder %s782_s0, %s1039_s13 }
 0x5c4   :  { %p788_p1 = pnand %p786_p0, %p783_p13 }
 0x5c6   :  { %791 = shalt.err (!%p788_p1)
}
 0x5c7   :  { %578 = dma.vmem_to_hbm [thread:$0]  %s576_s20, 128, %s1039_s13, [#allocation3]  }
 0x5c8   :  { %792 = dma.done.wait [#allocation3], 128  }
 0x5c9   :  { %793 = vsyncadd [#allocation3], 4294967168 }
 0x5ca   :  { %794 = dma.done.wait [#allocation5], 128  }
 0x5cb   :  { %795 = vsyncadd [#allocation5], 4294967168 }
 0x5cc   :  { %595 = vsyncpa [#allocation3], 1 }
 0x5cd   :  { %596 = vsyncpa [#allocation5], 1 }

</bundles_post_ra>
